<compile_context>
chip_gen: v6e
topology: v6e:2x2x1
jax: 0.10.0
libtpu: 0.0.40
codegen_flags: <defaults>
</compile_context>

<pallas_src>
import functools

import jax
import jax.numpy as jnp
from jax import lax
from jax.experimental import pallas as pl
from jax.experimental.pallas import tpu as pltpu

LANE = 128


def _round_up(x, m):
    return (x + m - 1) // m * m


def _pad2d(x, rows, cols):
    r, c = x.shape
    if r == rows and c == cols:
        return x
    return jnp.pad(x, ((0, rows - r), (0, cols - c)))


def _pick_tm(m_pad):
    # Largest row tile dividing m_pad while keeping >= 2 row blocks (v7x has
    # two TensorCores; a single "parallel" block would idle one of them).
    for tm in (512, 256, 128):
        if m_pad % tm == 0 and m_pad // tm >= 2:
            return tm
    return min(m_pad, 128)


def _pick_tk(k_pad):
    # Largest reduction tile dividing k_pad (fewer grid steps, fewer
    # accumulator revisits, closer to HBM roofline than 128-wide tiles).
    for tk in (512, 256, 128):
        if k_pad % tk == 0:
            return tk
    return 128


# ------------------------------ Pallas kernel --------------------------------

def _gcn_kernel(*refs, has_w1, has_w2, relu, has_res):
    # refs = (a_t, x, [w1], bias, [w2], [residual], out, acc_scratch)
    at_ref, x_ref = refs[0], refs[1]
    idx = 2
    w1_ref = w2_ref = res_ref = None
    if has_w1:
        w1_ref = refs[idx]; idx += 1
    b_ref = refs[idx]; idx += 1
    if has_w2:
        w2_ref = refs[idx]; idx += 1
    if has_res:
        res_ref = refs[idx]; idx += 1
    o_ref = refs[idx]
    acc_ref = refs[idx + 1]

    @pl.when(pl.program_id(1) == 0)
    def _init():
        acc_ref[...] = jnp.zeros_like(acc_ref)

    # Propagate: accumulate A_hat[i_block, k_block] @ X[k_block, :] in f32.
    acc_ref[...] += jnp.dot(at_ref[...], x_ref[...],
                            preferred_element_type=jnp.float32)

    @pl.when(pl.program_id(1) == pl.num_programs(1) - 1)
    def _finalize():
        y = acc_ref[...]
        if has_w1:
            # Feature transform rides the epilogue; W1 stays VMEM-resident.
            y = jnp.dot(y.astype(jnp.bfloat16), w1_ref[...],
                        preferred_element_type=jnp.float32)
        y = y + b_ref[...].astype(jnp.float32)
        if relu:
            # torch.relu followed by LeakyReLU(0.1) is the identity on >= 0,
            # so a single fused ReLU reproduces both ops exactly.
            y = jnp.maximum(y, 0.0)
        if has_w2:
            # Next layer's transform (h @ W2) fused as well -> the [N, hidden]
            # activation never leaves VMEM.
            y = jnp.dot(y.astype(jnp.bfloat16), w2_ref[...],
                        preferred_element_type=jnp.float32)
        if has_res:
            y = y + res_ref[...].astype(jnp.float32)
        o_ref[...] = y.astype(o_ref.dtype)


def gcn_propagate(a_t, x, *, bias, w1=None, w2=None, residual=None,
                  relu=False, out_dtype=jnp.float32):
    """out = [relu]((A_hat @ x) [@ w1] + bias) [@ w2] [+ residual].

    a_t:[M,K] bf16 (normalized adjacency, target-major), x:[K,F] bf16,
    w1:[F,H] bf16, w2:[H,O] bf16, bias f32, residual f32.
    M, K, F (and H, O) must be multiples of 128."""
    m, k = a_t.shape
    k2, f = x.shape
    assert k == k2 and m % LANE == 0 and k % LANE == 0 and f % LANE == 0

    out_f = f
    if w1 is not None:
        out_f = w1.shape[1]
    if w2 is not None:
        out_f = w2.shape[1]

    tm = _pick_tm(m)
    tk = _pick_tk(k)
    grid = (m // tm, k // tk)

    in_specs = [
        pl.BlockSpec((tm, tk), lambda i, kk: (i, kk)),   # A_hat tile
        pl.BlockSpec((tk, f), lambda i, kk: (kk, 0)),    # X tile (full feature width)
    ]
    operands = [a_t, x]
    if w1 is not None:
        in_specs.append(pl.BlockSpec(w1.shape, lambda i, kk: (0, 0)))   # resident
        operands.append(w1)
    in_specs.append(pl.BlockSpec((1, bias.shape[1]), lambda i, kk: (0, 0)))
    operands.append(bias)
    if w2 is not None:
        in_specs.append(pl.BlockSpec(w2.shape, lambda i, kk: (0, 0)))   # resident
        operands.append(w2)
    if residual is not None:
        in_specs.append(pl.BlockSpec((tm, out_f), lambda i, kk: (i, 0)))
        operands.append(residual)

    kernel = functools.partial(
        _gcn_kernel, has_w1=w1 is not None, has_w2=w2 is not None,
        relu=relu, has_res=residual is not None)

    return pl.pallas_call(
        kernel,
        out_shape=jax.ShapeDtypeStruct((m, out_f), out_dtype),
        grid=grid,
        in_specs=in_specs,
        out_specs=pl.BlockSpec((tm, out_f), lambda i, kk: (i, 0)),
        scratch_shapes=[pltpu.VMEM((tm, f), jnp.float32)],
        compiler_params=pltpu.CompilerParams(
            dimension_semantics=("parallel", "arbitrary"),
            vmem_limit_bytes=48 * 1024 * 1024),   # <= v7x physical 64 MiB
    )(*operands)


# ------------------------------ JAX glue --------------------------------------

def build_norm_adj_t(edge_index, num_nodes):
    """PyG gcn_norm: add *remaining* self loops, deg at target node,
    w = deg[src]^-1/2 * deg[dst]^-1/2.  Returns A_hat^T ([target, source]) so
    that out = A_hat^T @ XW aggregates at the target node."""
    src, dst = edge_index[0], edge_index[1]
    adj = jnp.zeros((num_nodes, num_nodes), jnp.float32).at[src, dst].add(1.0)
    # add_remaining_self_loops: only nodes WITHOUT an existing self loop get one.
    diag = jnp.diagonal(adj)
    adj = adj + jnp.diag(jnp.where(diag > 0, 0.0, 1.0))
    deg = adj.sum(axis=0)                               # in-degree at dst
    dinv = jnp.where(deg > 0, lax.rsqrt(deg), 0.0)
    a_norm = adj * dinv[:, None] * dinv[None, :]        # [src, dst]
    return a_norm.T                                     # [dst, src]


def layer_gcn_forward(params, x, edge_index, *, gcn_layer_num=1, residual=False):
    n, in_c = x.shape
    w1, b1 = params["conv1"]
    hid_c = w1.shape[1]
    if gcn_layer_num == 1:
        out_c = hid_c
    else:
        w2, b2 = params["conv2"]
        out_c = w2.shape[1]
    if residual:
        assert in_c == out_c, "residual requires in_channels == out_channels"

    n_pad = _round_up(n, LANE)
    in_pad = _round_up(in_c, LANE)
    hid_pad = _round_up(hid_c, LANE)
    out_pad = _round_up(out_c, LANE)

    # Dense normalized adjacency (bf16 MXU input, f32 accumulation in-kernel).
    # Zero-padded rows/cols contribute nothing; padded output rows are sliced.
    a_t = _pad2d(build_norm_adj_t(edge_index, n), n_pad, n_pad).astype(jnp.bfloat16)

    x_pad = _pad2d(x, n_pad, in_pad).astype(jnp.float32)
    x_bf = x_pad.astype(jnp.bfloat16)

    w1p = _pad2d(w1, in_pad, hid_pad).astype(jnp.bfloat16)
    b1p = _pad2d(b1, 1, hid_pad).astype(jnp.float32)

    res = _pad2d(x, n_pad, out_pad).astype(jnp.float32) if residual else None

    if gcn_layer_num == 1:
        # out = (A_hat @ X) @ W1 + b1 (+ x) — one fused call (reassociated).
        out = gcn_propagate(a_t, x_bf, w1=w1p, bias=b1p, residual=res,
                            out_dtype=jnp.float32)
    else:
        w2p = _pad2d(w2, hid_pad, out_pad).astype(jnp.bfloat16)
        b2p = _pad2d(b2, 1, out_pad).astype(jnp.float32)

        # call 1: XW2 = relu((A_hat @ X) @ W1 + b1) @ W2  (propagate over the
        #         narrow input width; both transforms live in the epilogue).
        xw2 = gcn_propagate(a_t, x_bf, w1=w1p, bias=b1p, w2=w2p, relu=True,
                            out_dtype=jnp.bfloat16)
        # call 2: out = A_hat @ XW2 + b2 (+ x)
        out = gcn_propagate(a_t, xw2, bias=b2p, residual=res,
                            out_dtype=jnp.float32)

    return out[:n, :out_c]


# ------------------------------ main -------------------------------------------

if __name__ == "__main__":
    key = jax.random.PRNGKey(0)
    kx, ke1, ke2, kw1, kw2 = jax.random.split(key, 5)

    num_nodes = 200
    in_channels = 64
    hidden_channels = 96
    out_channels = 64
    num_edges = 800
    gcn_layer_num = 2
    residual = True

    x = jax.random.normal(kx, (num_nodes, in_channels), jnp.float32)
    src = jax.random.randint(ke1, (num_edges,), 0, num_nodes)
    dst = jax.random.randint(ke2, (num_edges,), 0, num_nodes)
    edge_index = jnp.stack([src, dst]).astype(jnp.int32)

    def glorot(k, shape):
        a = (6.0 / (shape[0] + shape[1])) ** 0.5
        return jax.random.uniform(k, shape, jnp.float32, -a, a)

    params = {
        "conv1": (glorot(kw1, (in_channels, hidden_channels)),
                  jnp.zeros((1, hidden_channels), jnp.float32)),
        "conv2": (glorot(kw2, (hidden_channels, out_channels)),
                  jnp.zeros((1, out_channels), jnp.float32)),
    }

    fwd = jax.jit(functools.partial(layer_gcn_forward,
                                    gcn_layer_num=gcn_layer_num,
                                    residual=residual))
    out = jax.block_until_ready(fwd(params, x, edge_index))

    # plain-JAX f32 reference (loose tolerance: kernels use bf16 MXU inputs)
    a_t_ref = build_norm_adj_t(edge_index, num_nodes)
    w1, b1 = params["conv1"]
    w2, b2 = params["conv2"]
    ref = a_t_ref @ (x @ w1) + b1
    ref = jnp.maximum(ref, 0.0)          # relu; LeakyReLU(0.1) is identity on >=0
    ref = a_t_ref @ (ref @ w2) + b2
    if residual:
        ref = ref + x

    assert out.shape == (num_nodes, out_channels) and out.dtype == jnp.float32
    assert bool(jnp.all(jnp.isfinite(out)))
    err = float(jnp.max(jnp.abs(out - ref)))
    scale = float(jnp.max(jnp.abs(ref)))
    assert err <= 0.05 * scale + 1e-3, f"mismatch: err={err}, scale={scale}"
    print("KERNEL_OK")
</pallas_src>

<mosaic_0001>
module attributes {stable_mosaic.version = 11 : i64} {
  func.func private @main(%arg0: i32) attributes {dimension_semantics = [#tpu.dimension_semantics<core_parallel>], iteration_bounds = array<i64: 2>, tpu.core_type = #tpu.core_type<sc_scalar_subcore>, window_params = []} {
    return
  }
}

module attributes {stable_mosaic.version = 11 : i64} {
  func.func private @main(%arg0: i32) attributes {dimension_semantics = [#tpu.dimension_semantics<core_parallel>], iteration_bounds = array<i64: 2>, tpu.core_type = #tpu.core_type<sc_scalar_subcore>, window_params = []} {
    return
  }
}

module attributes {stable_mosaic.version = 11 : i64} {
  func.func @_gcn_kernel(%arg0: i32, %arg1: i32, %arg2: memref<128x256xbf16, #tpu.memory_space<vmem>>, %arg3: memref<256x128xbf16, #tpu.memory_space<vmem>>, %arg4: memref<1x128xf32, #tpu.memory_space<vmem>>, %arg5: memref<128x128xf32, #tpu.memory_space<vmem>>, %arg6: memref<128x128xf32, #tpu.memory_space<vmem>>, %arg7: memref<128x128xf32, #tpu.memory_space<vmem>>) attributes {dimension_semantics = [#tpu.dimension_semantics<parallel>, #tpu.dimension_semantics<arbitrary>], iteration_bounds = array<i64: 2, 1>, scalar_prefetch = 0 : i64, scratch_operands = 1 : i64, tpu.core_type = #tpu.core_type<tc>, window_params = [{transform_indices = @transform_0, window_bounds = array<i64: 128, 256>}, {transform_indices = @transform_1, window_bounds = array<i64: 256, 128>}, {pipeline_mode = #tpu.pipeline_mode<synchronous>, transform_indices = @transform_2, window_bounds = array<i64: 1, 128>}, {transform_indices = @transform_3, window_bounds = array<i64: 128, 128>}, {transform_indices = @transform_4, window_bounds = array<i64: 128, 128>}]} {
    %c0_i32 = arith.constant 0 : i32
    %0 = arith.cmpi eq, %arg1, %c0_i32 : i32
    %1 = arith.extui %0 : i1 to i32
    %c0_i32_0 = arith.constant 0 : i32
    %2 = arith.cmpi ne, %1, %c0_i32_0 : i32
    scf.if %2 {
      %cst_10 = arith.constant 0.000000e+00 : f32
      %12 = vector.broadcast %cst_10 : f32 to vector<128x128xf32>
      %c0_11 = arith.constant 0 : index
      %c0_12 = arith.constant 0 : index
      %13 = vector.load %arg7[%c0_11, %c0_12] : memref<128x128xf32, #tpu.memory_space<vmem>>, vector<128x128xf32>
      tpu.vector_store %arg7[%c0_11, %c0_12], %12 {strides = array<i32>} : memref<128x128xf32, #tpu.memory_space<vmem>>, vector<128x128xf32>,
    } else {
    }
    %c0 = arith.constant 0 : index
    %c0_1 = arith.constant 0 : index
    %3 = vector.load %arg7[%c0, %c0_1] : memref<128x128xf32, #tpu.memory_space<vmem>>, vector<128x128xf32>
    %c0_2 = arith.constant 0 : index
    %c0_3 = arith.constant 0 : index
    %4 = vector.load %arg2[%c0_2, %c0_3] : memref<128x256xbf16, #tpu.memory_space<vmem>>, vector<128x256xbf16>
    %c0_4 = arith.constant 0 : index
    %c0_5 = arith.constant 0 : index
    %5 = vector.load %arg3[%c0_4, %c0_5] : memref<256x128xbf16, #tpu.memory_space<vmem>>, vector<256x128xbf16>
    %cst = arith.constant dense<0.000000e+00> : vector<128x128xf32>
    %6 = tpu.matmul %4, %5, %cst {dimension_numbers = #tpu.dot_dimension_numbers<[1], [0], [0], [1], [0, 0, 1, 1], [], []>} : vector<128x256xbf16>, vector<256x128xbf16>, vector<128x128xf32> -> vector<128x128xf32>
    %7 = arith.addf %3, %6 : vector<128x128xf32>
    %c0_6 = arith.constant 0 : index
    %c0_7 = arith.constant 0 : index
    %8 = vector.load %arg7[%c0_6, %c0_7] : memref<128x128xf32, #tpu.memory_space<vmem>>, vector<128x128xf32>
    tpu.vector_store %arg7[%c0_6, %c0_7], %7 {strides = array<i32>} : memref<128x128xf32, #tpu.memory_space<vmem>>, vector<128x128xf32>,
    %c0_i32_8 = arith.constant 0 : i32
    %9 = arith.cmpi eq, %arg1, %c0_i32_8 : i32
    %10 = arith.extui %9 : i1 to i32
    %c0_i32_9 = arith.constant 0 : i32
    %11 = arith.cmpi ne, %10, %c0_i32_9 : i32
    scf.if %11 {
      %c0_10 = arith.constant 0 : index
      %c0_11 = arith.constant 0 : index
      %12 = vector.load %arg7[%c0_10, %c0_11] : memref<128x128xf32, #tpu.memory_space<vmem>>, vector<128x128xf32>
      %c0_12 = arith.constant 0 : index
      %c0_13 = arith.constant 0 : index
      %13 = vector.load %arg4[%c0_12, %c0_13] : memref<1x128xf32, #tpu.memory_space<vmem>>, vector<1x128xf32>
      %14 = vector.broadcast %13 : vector<1x128xf32> to vector<128x128xf32>
      %15 = arith.addf %12, %14 : vector<128x128xf32>
      %c0_14 = arith.constant 0 : index
      %c0_15 = arith.constant 0 : index
      %16 = vector.load %arg5[%c0_14, %c0_15] : memref<128x128xf32, #tpu.memory_space<vmem>>, vector<128x128xf32>
      %17 = arith.addf %15, %16 : vector<128x128xf32>
      %c0_16 = arith.constant 0 : index
      %c0_17 = arith.constant 0 : index
      %18 = vector.load %arg6[%c0_16, %c0_17] : memref<128x128xf32, #tpu.memory_space<vmem>>, vector<128x128xf32>
      tpu.vector_store %arg6[%c0_16, %c0_17], %17 {strides = array<i32>} : memref<128x128xf32, #tpu.memory_space<vmem>>, vector<128x128xf32>,
    } else {
    }
    return
  }
  func.func @transform_0(%arg0: i32, %arg1: i32) -> (i32, i32) {
    %c0_i32 = arith.constant 0 : i32
    return %arg0, %arg1 : i32, i32
  }
  func.func @transform_1(%arg0: i32, %arg1: i32) -> (i32, i32) {
    %c0_i32 = arith.constant 0 : i32
    %c0_i32_0 = arith.constant 0 : i32
    return %arg1, %c0_i32 : i32, i32
  }
  func.func @transform_2(%arg0: i32, %arg1: i32) -> (i32, i32) {
    %c0_i32 = arith.constant 0 : i32
    %c0_i32_0 = arith.constant 0 : i32
    %c0_i32_1 = arith.constant 0 : i32
    return %c0_i32, %c0_i32_0 : i32, i32
  }
  func.func @transform_3(%arg0: i32, %arg1: i32) -> (i32, i32) {
    %c0_i32 = arith.constant 0 : i32
    %c0_i32_0 = arith.constant 0 : i32
    return %arg0, %c0_i32 : i32, i32
  }
  func.func @transform_4(%arg0: i32, %arg1: i32) -> (i32, i32) {
    %c0_i32 = arith.constant 0 : i32
    %c0_i32_0 = arith.constant 0 : i32
    return %arg0, %c0_i32 : i32, i32
  }
}

module attributes {stable_mosaic.version = 11 : i64} {
  func.func @_gcn_kernel(%arg0: i32, %arg1: i32, %arg2: memref<128x256xbf16, #tpu.memory_space<vmem>>, %arg3: memref<256x128xbf16, #tpu.memory_space<vmem>>, %arg4: memref<128x128xbf16, #tpu.memory_space<vmem>>, %arg5: memref<1x128xf32, #tpu.memory_space<vmem>>, %arg6: memref<128x128xbf16, #tpu.memory_space<vmem>>, %arg7: memref<128x128xbf16, #tpu.memory_space<vmem>>, %arg8: memref<128x128xf32, #tpu.memory_space<vmem>>) attributes {dimension_semantics = [#tpu.dimension_semantics<parallel>, #tpu.dimension_semantics<arbitrary>], iteration_bounds = array<i64: 2, 1>, scalar_prefetch = 0 : i64, scratch_operands = 1 : i64, tpu.core_type = #tpu.core_type<tc>, window_params = [{transform_indices = @transform_0, window_bounds = array<i64: 128, 256>}, {transform_indices = @transform_1, window_bounds = array<i64: 256, 128>}, {pipeline_mode = #tpu.pipeline_mode<synchronous>, transform_indices = @transform_2, window_bounds = array<i64: 128, 128>}, {pipeline_mode = #tpu.pipeline_mode<synchronous>, transform_indices = @transform_3, window_bounds = array<i64: 1, 128>}, {pipeline_mode = #tpu.pipeline_mode<synchronous>, transform_indices = @transform_4, window_bounds = array<i64: 128, 128>}, {transform_indices = @transform_5, window_bounds = array<i64: 128, 128>}]} {
    %c0_i32 = arith.constant 0 : i32
    %0 = arith.cmpi eq, %arg1, %c0_i32 : i32
    %1 = arith.extui %0 : i1 to i32
    %c0_i32_0 = arith.constant 0 : i32
    %2 = arith.cmpi ne, %1, %c0_i32_0 : i32
    scf.if %2 {
      %cst_10 = arith.constant 0.000000e+00 : f32
      %12 = vector.broadcast %cst_10 : f32 to vector<128x128xf32>
      %c0_11 = arith.constant 0 : index
      %c0_12 = arith.constant 0 : index
      %13 = vector.load %arg8[%c0_11, %c0_12] : memref<128x128xf32, #tpu.memory_space<vmem>>, vector<128x128xf32>
      tpu.vector_store %arg8[%c0_11, %c0_12], %12 {strides = array<i32>} : memref<128x128xf32, #tpu.memory_space<vmem>>, vector<128x128xf32>,
    } else {
    }
    %c0 = arith.constant 0 : index
    %c0_1 = arith.constant 0 : index
    %3 = vector.load %arg8[%c0, %c0_1] : memref<128x128xf32, #tpu.memory_space<vmem>>, vector<128x128xf32>
    %c0_2 = arith.constant 0 : index
    %c0_3 = arith.constant 0 : index
    %4 = vector.load %arg2[%c0_2, %c0_3] : memref<128x256xbf16, #tpu.memory_space<vmem>>, vector<128x256xbf16>
    %c0_4 = arith.constant 0 : index
    %c0_5 = arith.constant 0 : index
    %5 = vector.load %arg3[%c0_4, %c0_5] : memref<256x128xbf16, #tpu.memory_space<vmem>>, vector<256x128xbf16>
    %cst = arith.constant dense<0.000000e+00> : vector<128x128xf32>
    %6 = tpu.matmul %4, %5, %cst {dimension_numbers = #tpu.dot_dimension_numbers<[1], [0], [0], [1], [0, 0, 1, 1], [], []>} : vector<128x256xbf16>, vector<256x128xbf16>, vector<128x128xf32> -> vector<128x128xf32>
    %7 = arith.addf %3, %6 : vector<128x128xf32>
    %c0_6 = arith.constant 0 : index
    %c0_7 = arith.constant 0 : index
    %8 = vector.load %arg8[%c0_6, %c0_7] : memref<128x128xf32, #tpu.memory_space<vmem>>, vector<128x128xf32>
    tpu.vector_store %arg8[%c0_6, %c0_7], %7 {strides = array<i32>} : memref<128x128xf32, #tpu.memory_space<vmem>>, vector<128x128xf32>,
    %c0_i32_8 = arith.constant 0 : i32
    %9 = arith.cmpi eq, %arg1, %c0_i32_8 : i32
    %10 = arith.extui %9 : i1 to i32
    %c0_i32_9 = arith.constant 0 : i32
    %11 = arith.cmpi ne, %10, %c0_i32_9 : i32
    scf.if %11 {
      %c0_10 = arith.constant 0 : index
      %c0_11 = arith.constant 0 : index
      %12 = vector.load %arg8[%c0_10, %c0_11] : memref<128x128xf32, #tpu.memory_space<vmem>>, vector<128x128xf32>
      %13 = arith.truncf %12 : vector<128x128xf32> to vector<128x128xbf16>
      %c0_12 = arith.constant 0 : index
      %c0_13 = arith.constant 0 : index
      %14 = vector.load %arg4[%c0_12, %c0_13] : memref<128x128xbf16, #tpu.memory_space<vmem>>, vector<128x128xbf16>
      %cst_14 = arith.constant dense<0.000000e+00> : vector<128x128xf32>
      %15 = tpu.matmul %13, %14, %cst_14 {dimension_numbers = #tpu.dot_dimension_numbers<[1], [0], [0], [1], [0, 0, 1, 1], [], []>} : vector<128x128xbf16>, vector<128x128xbf16>, vector<128x128xf32> -> vector<128x128xf32>
      %c0_15 = arith.constant 0 : index
      %c0_16 = arith.constant 0 : index
      %16 = vector.load %arg5[%c0_15, %c0_16] : memref<1x128xf32, #tpu.memory_space<vmem>>, vector<1x128xf32>
      %17 = vector.broadcast %16 : vector<1x128xf32> to vector<128x128xf32>
      %18 = arith.addf %15, %17 : vector<128x128xf32>
      %cst_17 = arith.constant 0.000000e+00 : f32
      %19 = vector.broadcast %cst_17 : f32 to vector<128x128xf32>
      %20 = arith.maximumf %18, %19 : vector<128x128xf32>
      %21 = arith.truncf %20 : vector<128x128xf32> to vector<128x128xbf16>
      %c0_18 = arith.constant 0 : index
      %c0_19 = arith.constant 0 : index
      %22 = vector.load %arg6[%c0_18, %c0_19] : memref<128x128xbf16, #tpu.memory_space<vmem>>, vector<128x128xbf16>
      %cst_20 = arith.constant dense<0.000000e+00> : vector<128x128xf32>
      %23 = tpu.matmul %21, %22, %cst_20 {dimension_numbers = #tpu.dot_dimension_numbers<[1], [0], [0], [1], [0, 0, 1, 1], [], []>} : vector<128x128xbf16>, vector<128x128xbf16>, vector<128x128xf32> -> vector<128x128xf32>
      %24 = arith.truncf %23 : vector<128x128xf32> to vector<128x128xbf16>
      %c0_21 = arith.constant 0 : index
      %c0_22 = arith.constant 0 : index
      %25 = vector.load %arg7[%c0_21, %c0_22] : memref<128x128xbf16, #tpu.memory_space<vmem>>, vector<128x128xbf16>
      tpu.vector_store %arg7[%c0_21, %c0_22], %24 {strides = array<i32>} : memref<128x128xbf16, #tpu.memory_space<vmem>>, vector<128x128xbf16>,
    } else {
    }
    return
  }
  func.func @transform_0(%arg0: i32, %arg1: i32) -> (i32, i32) {
    %c0_i32 = arith.constant 0 : i32
    return %arg0, %arg1 : i32, i32
  }
  func.func @transform_1(%arg0: i32, %arg1: i32) -> (i32, i32) {
    %c0_i32 = arith.constant 0 : i32
    %c0_i32_0 = arith.constant 0 : i32
    return %arg1, %c0_i32 : i32, i32
  }
  func.func @transform_2(%arg0: i32, %arg1: i32) -> (i32, i32) {
    %c0_i32 = arith.constant 0 : i32
    %c0_i32_0 = arith.constant 0 : i32
    %c0_i32_1 = arith.constant 0 : i32
    return %c0_i32, %c0_i32_0 : i32, i32
  }
  func.func @transform_3(%arg0: i32, %arg1: i32) -> (i32, i32) {
    %c0_i32 = arith.constant 0 : i32
    %c0_i32_0 = arith.constant 0 : i32
    %c0_i32_1 = arith.constant 0 : i32
    return %c0_i32, %c0_i32_0 : i32, i32
  }
  func.func @transform_4(%arg0: i32, %arg1: i32) -> (i32, i32) {
    %c0_i32 = arith.constant 0 : i32
    %c0_i32_0 = arith.constant 0 : i32
    %c0_i32_1 = arith.constant 0 : i32
    return %c0_i32, %c0_i32_0 : i32, i32
  }
  func.func @transform_5(%arg0: i32, %arg1: i32) -> (i32, i32) {
    %c0_i32 = arith.constant 0 : i32
    %c0_i32_0 = arith.constant 0 : i32
    return %arg0, %c0_i32 : i32, i32
  }
}

</mosaic_0001>

<bundles_post_ra>
// kernel: layer_gcn_forward.3
= control target key start
LH: loop header
LB: loop body
LE: loop exit
PB: predicated region body
PF: predicated region fallthrough
CT: control target
= control target key end

     0   :  { %s1096_s15 = smov 0   ;;  %s1098_s16 = smov 0   ;;  %s1260_s0 = inlined_call_operand.vmem [shape: bf16[256,256], index: 0, kind: input, shape index: {}]   ;;  %s1261_s1 = inlined_call_operand.vmem [shape: bf16[256,128], index: 1, kind: input, shape index: {}]   ;;  %s1262_s2 = inlined_call_operand.vmem [shape: f32[1,128], index: 2, kind: input, shape index: {}]   ;;  %s1263_s3 = inlined_call_operand.vmem [shape: f32[256,128], index: 3, kind: input, shape index: {}]   ;;  %s1264_s4 = inlined_call_operand.vmem [shape: f32[256,128], index: 4, kind: output, shape index: {}]  }
   0x1   :  { %s1100_s17 = smov 0  }
   0x2 LB: > { %s26_s18 = sadd.s32 1, %s1065_s16  ;;  %p859_p0 = scmp.ge.s32.totalorder %s1069_s17, 1  ;;  %s1069_s17 = sphi %s1100_s17, %s14_s17   ;;  %s1065_s16 = sphi %s1098_s16, %s1266_s16   ;;  %s1061_s15 = sphi %s1096_s15, %s1265_s15  }
   0x3   : > { %p28_p1 = scmp.ge.s32.totalorder %s26_s18, 2  ;;  %p205_p2 = scmp.lt.s32.totalorder %s1069_s17, 3 }
   0x5   : > { %s1268_s18 = smov (%p28_p1, %s26_s18), 0  ;;  %p206_p3 = pnand %p859_p0, %p205_p2 }
   0x6   : > { %s860_s21 = sshll.u32 (!%p206_p3), %s1061_s15, 4 }
   0x7   : > { %209 = sbr.rel (%p206_p3) target bundleno = 275 (0x113), region = 36  ;;  %p248_p4 = scmp.lt.s32.totalorder (!%p206_p3), %s860_s21, 31 }
   0xc   : > { %v1007_v0 = vld [vmem:[%s1261_s1 + $0x78] sm:$0xff]   ;;  %v1009_v2 = vld [vmem:[%s1261_s1 + $0x70] sm:$0xff]   ;;  %v1011_v4 = vld [vmem:[%s1261_s1 + $0x68] sm:$0xff]   ;;  %s1270_s21 = smov (!%p248_p4, %s860_s21), 31 }
   0xd   : > { %v1008_v1 = vld [vmem:[%s1261_s1 + $0x38] sm:$0xff]   ;;  %903 = vmatprep.subr.bf16.mxu0 %v1007_v0  ;;  %967 = vmatprep.subr.bf16.mxu1 %v1007_v0  ;;  %v1010_v3 = vld [vmem:[%s1261_s1 + $0x30] sm:$0xff]   ;;  %v1012_v5 = vld [vmem:[%s1261_s1 + $0x28] sm:$0xff]   ;;  %s1138_s10 = sshll.u32 %s1270_s21, 3 }
   0xe   : > { %904 = vmatpush3.bf16.msra.mxu0 %v1008_v1  ;;  %975 = vmatpush3.bf16.msra.mxu1 %v1008_v1  ;;  %v1013_v6 = vld [vmem:[%s1261_s1 + $0x60] sm:$0xff]   ;;  %v1015_v8 = vld [vmem:[%s1261_s1 + $0x58] sm:$0xff]   ;;  %s1147_s15 = scalar_lea.vmem %s1260_s0, %s1138_s10  ;;  %v1017_v10 = vld [vmem:[%s1261_s1 + $0x50] sm:$0xff]   ;;  %s1190_s9 = scalar_lea.vmem %s1263_s3, %s1138_s10 }
   0xf   : > { %905 = vmatprep.subr.bf16.mxu0 %v1009_v2  ;;  %968 = vmatprep.subr.bf16.mxu1 %v1009_v2  ;;  %v1014_v7 = vld [vmem:[%s1261_s1 + $0x20] sm:$0xff]   ;;  %v1016_v9 = vld [vmem:[%s1261_s1 + $0x18] sm:$0xff]   ;;  %v1018_v13 = vld [vmem:[%s1261_s1 + $0x10] sm:$0xff]  }
  0x10   : > { %v1025_v11 = vld [vmem:[%s1147_s15 + $0x4] ss:$8 sps:$4 sm:$0xff]   ;;  %v1023_v18 = vld [vmem:[%s1147_s15] ss:$8 sps:$4 sm:$0xff]   ;;  %v1029_v20 = vld [vmem:[%s1147_s15 + $0x14] ss:$8 sps:$4 sm:$0xff]  }
  0x11   : > { %v1028_v12 = vld [vmem:[%s1147_s15 + $0x44] ss:$8 sps:$4 sm:$0xff]   ;;  %569 = vmatprep.mubr.bf16.mxu0 %v1025_v11  ;;  %v1026_v19 = vld [vmem:[%s1147_s15 + $0x40] ss:$8 sps:$4 sm:$0xff]   ;;  %v1031_v21 = vld [vmem:[%s1147_s15 + $0x54] ss:$8 sps:$4 sm:$0xff]  }
  0x12   : > { %906 = vmatpush3.bf16.msra.mxu0 %v1010_v3  ;;  %976 = vmatpush3.bf16.msra.mxu1 %v1010_v3  ;;  %v1019_v14 = vld [vmem:[%s1261_s1 + $0x48] sm:$0xff]   ;;  %v1021_v16 = vld [vmem:[%s1261_s1 + $0x40] sm:$0xff]   ;;  %v1033_v22 = vld [vmem:[%s1147_s15 + $0x10] ss:$8 sps:$4 sm:$0xff]  }
  0x13   : > { %907 = vmatprep.subr.bf16.mxu0 %v1011_v4  ;;  %969 = vmatprep.subr.bf16.mxu1 %v1011_v4  ;;  %v1020_v15 = vld [vmem:[%s1261_s1 + $0x8] sm:$0xff]   ;;  %v1022_v17 = vld [vmem:[%s1261_s1] sm:$0xff]   ;;  %v1034_v23 = vld [vmem:[%s1147_s15 + $0x50] ss:$8 sps:$4 sm:$0xff]  }
  0x14   : > { %601 = vmatprep.mubr.bf16.mxu1 %v1028_v12  ;;  %v1035_v24 = vld [vmem:[%s1147_s15 + $0x24] ss:$8 sps:$4 sm:$0xff]   ;;  %v1039_v26 = vld [vmem:[%s1147_s15 + $0x20] ss:$8 sps:$4 sm:$0xff]   ;;  %v1041_v28 = vld [vmem:[%s1147_s15 + $0x34] ss:$8 sps:$4 sm:$0xff]  }
  0x15   : > { %v1037_v25 = vld [vmem:[%s1147_s15 + $0x64] ss:$8 sps:$4 sm:$0xff]   ;;  %v1040_v27 = vld [vmem:[%s1147_s15 + $0x60] ss:$8 sps:$4 sm:$0xff]   ;;  %v1043_v29 = vld [vmem:[%s1147_s15 + $0x74] ss:$8 sps:$4 sm:$0xff]  }
  0x16   : > { %908 = vmatpush3.bf16.msra.mxu0 %v1012_v5  ;;  %977 = vmatpush3.bf16.msra.mxu1 %v1012_v5  ;;  %v1045_v30 = vld [vmem:[%s1147_s15 + $0x30] ss:$8 sps:$4 sm:$0xff]   ;;  %v1195_v35 = vld [vmem:[%s1262_s2] ss:$0 sm:$0xff]  ;;  %v709_v51 = vld [vmem:[%s1190_s9 + $0x8] sm:$0xff] }
  0x17   : > { %909 = vmatprep.subr.bf16.mxu0 %v1013_v6  ;;  %970 = vmatprep.subr.bf16.mxu1 %v1013_v6  ;;  %v1046_v31 = vld [vmem:[%s1147_s15 + $0x70] ss:$8 sps:$4 sm:$0xff]   ;;  %v708_v39 = vld [vmem:[%s1190_s9] sm:$0xff]  ;;  %s1205_s15 = scalar_lea.vmem %s1264_s4, %s1138_s10  ;;  %v717_v52 = vld [vmem:[%s1190_s9 + $0x48] sm:$0xff] }
  0x18   : > { %v716_v40 = vld [vmem:[%s1190_s9 + $0x40] sm:$0xff]  ;;  %v710_v63 = vld [vmem:[%s1190_s9 + $0x10] sm:$0xff]  ;;  %v711_v11 = vld [vmem:[%s1190_s9 + $0x18] sm:$0xff] }
  0x19   : > { %v718_v0 = vld [vmem:[%s1190_s9 + $0x50] sm:$0xff]  ;;  %v719_v12 = vld [vmem:[%s1190_s9 + $0x58] sm:$0xff] }
  0x1a   : > { %910 = vmatpush3.bf16.msra.mxu0 %v1014_v7  ;;  %978 = vmatpush3.bf16.msra.mxu1 %v1014_v7 }
  0x1b   : > { %911 = vmatprep.subr.bf16.mxu0 %v1015_v8  ;;  %971 = vmatprep.subr.bf16.mxu1 %v1015_v8 }
  0x1e   : > { %912 = vmatpush3.bf16.msra.mxu0 %v1016_v9  ;;  %979 = vmatpush3.bf16.msra.mxu1 %v1016_v9 }
  0x1f   : > { %913 = vmatprep.subr.bf16.mxu0 %v1017_v10  ;;  %972 = vmatprep.subr.bf16.mxu1 %v1017_v10 }
  0x22   : > { %914 = vmatpush3.bf16.msra.mxu0 %v1018_v13  ;;  %980 = vmatpush3.bf16.msra.mxu1 %v1018_v13 }
  0x23   : > { %915 = vmatprep.subr.bf16.mxu0 %v1019_v14  ;;  %973 = vmatprep.subr.bf16.mxu1 %v1019_v14 }
  0x26   : > { %916 = vmatpush3.bf16.msra.mxu0 %v1020_v15  ;;  %981 = vmatpush3.bf16.msra.mxu1 %v1020_v15 }
  0x27   : > { %917 = vmatprep.subr.bf16.mxu0 %v1021_v16  ;;  %974 = vmatprep.subr.bf16.mxu1 %v1021_v16 }
  0x2a   : > { %918 = vmatpush3.bf16.msra.mxu0 %v1022_v17  ;;  %982 = vmatpush3.bf16.msra.mxu1 %v1022_v17 }
  0x2d   : > { %570 = vmatmul.mubr.bf16.vlgmr.msra.gmra.mxu0 %v1023_v18  ;;  %602 = vmatmul.mubr.bf16.vlgmr.msra.gmra.mxu1 %v1026_v19 }
  0x2e   : > { %577 = vmatprep.mubr.bf16.mxu0 %v1029_v20  ;;  %609 = vmatprep.mubr.bf16.mxu1 %v1031_v21 }
  0x35   : > { %578 = vmatmul.mubr.bf16.gmra.mxu0 %v1033_v22  ;;  %610 = vmatmul.mubr.bf16.gmra.mxu1 %v1034_v23  ;;  %v712_v23 = vld [vmem:[%s1190_s9 + $0x20] sm:$0xff] }
  0x36   : > { %585 = vmatprep.mubr.bf16.mxu0 %v1035_v24  ;;  %617 = vmatprep.mubr.bf16.mxu1 %v1037_v25  ;;  %v720_v24 = vld [vmem:[%s1190_s9 + $0x60] sm:$0xff] }
  0x3d   : > { %586 = vmatmul.mubr.bf16.gmra.mxu0 %v1039_v26  ;;  %618 = vmatmul.mubr.bf16.gmra.mxu1 %v1040_v27 }
  0x3e   : > { %593 = vmatprep.mubr.bf16.mxu0 %v1041_v28  ;;  %625 = vmatprep.mubr.bf16.mxu1 %v1043_v29 }
  0x45   : > { %594 = vmatmul.mubr.bf16.gmra.mxu0 %v1045_v30  ;;  %626 = vmatmul.mubr.bf16.gmra.mxu1 %v1046_v31 }
  0xed   : > { %v919_v32 = vpop.f32.mrf.mxu0  ;;  %v943_v33 = vpop.f32.mrf.mxu1 }
  0xef   : > { %v920_v34 = vpop.f32.mrf.mxu0  ;;  %v944_v36 = vpop.f32.mrf.mxu1 }
  0xf0   : > { %v921_v37 = vadd.f32 %v920_v34, %v919_v32  ;;  %v945_v38 = vadd.f32 %v944_v36, %v943_v33  ;;  %v713_v36 = vld [vmem:[%s1190_s9 + $0x28] sm:$0xff] }
  0xf1   : > { %v922_v41 = vpop.f32.mrf.mxu0  ;;  %v946_v42 = vpop.f32.mrf.mxu1 }
  0xf2   : > { %v692_v43 = vadd.f32 %v921_v37, %v1195_v35  ;;  %v700_v44 = vadd.f32 %v945_v38, %v1195_v35  ;;  %v721_v37 = vld [vmem:[%s1190_s9 + $0x68] sm:$0xff] }
  0xf3   : > { %v923_v45 = vpop.f32.mrf.mxu0  ;;  %v947_v46 = vpop.f32.mrf.mxu1 }
  0xf4   : > { %v724_v47 = vadd.f32 %v708_v39, %v692_v43  ;;  %v732_v48 = vadd.f32 %v716_v40, %v700_v44  ;;  %v924_v49 = vadd.f32 %v923_v45, %v922_v41  ;;  %v948_v50 = vadd.f32 %v947_v46, %v946_v42 }
  0xf5   : > { %v925_v53 = vpop.f32.mrf.mxu0  ;;  %v949_v54 = vpop.f32.mrf.mxu1 }
  0xf6   : > { %740 = vst [vmem:[%s1205_s15] sm:$0xff] %v724_v47  ;;  %748 = vst [vmem:[%s1205_s15 + $0x40] sm:$0xff] %v732_v48  ;;  %v693_v55 = vadd.f32 %v924_v49, %v1195_v35  ;;  %v701_v56 = vadd.f32 %v948_v50, %v1195_v35  ;;  %v714_v48 = vld [vmem:[%s1190_s9 + $0x30] sm:$0xff] }
  0xf7   : > { %v926_v57 = vpop.f32.mrf.mxu0  ;;  %v950_v58 = vpop.f32.mrf.mxu1  ;;  %v722_v49 = vld [vmem:[%s1190_s9 + $0x70] sm:$0xff] }
  0xf8   : > { %v725_v59 = vadd.f32 %v709_v51, %v693_v55  ;;  %v733_v60 = vadd.f32 %v717_v52, %v701_v56  ;;  %v927_v61 = vadd.f32 %v926_v57, %v925_v53  ;;  %v951_v62 = vadd.f32 %v950_v58, %v949_v54 }
  0xf9   : > { %v928_v1 = vpop.f32.mrf.mxu0  ;;  %v952_v2 = vpop.f32.mrf.mxu1 }
  0xfa   : > { %741 = vst [vmem:[%s1205_s15 + $0x8] sm:$0xff] %v725_v59  ;;  %749 = vst [vmem:[%s1205_s15 + $0x48] sm:$0xff] %v733_v60  ;;  %v694_v3 = vadd.f32 %v927_v61, %v1195_v35  ;;  %v702_v4 = vadd.f32 %v951_v62, %v1195_v35  ;;  %v715_v60 = vld [vmem:[%s1190_s9 + $0x38] sm:$0xff] }
  0xfb   : > { %v929_v5 = vpop.f32.mrf.mxu0  ;;  %v953_v6 = vpop.f32.mrf.mxu1  ;;  %v723_v61 = vld [vmem:[%s1190_s9 + $0x78] sm:$0xff] }
  0xfc   : > { %v726_v7 = vadd.f32 %v710_v63, %v694_v3  ;;  %v734_v8 = vadd.f32 %v718_v0, %v702_v4  ;;  %v930_v9 = vadd.f32 %v929_v5, %v928_v1  ;;  %v954_v10 = vadd.f32 %v953_v6, %v952_v2 }
  0xfd   : > { %v931_v13 = vpop.f32.mrf.mxu0  ;;  %v955_v14 = vpop.f32.mrf.mxu1 }
  0xfe   : > { %742 = vst [vmem:[%s1205_s15 + $0x10] sm:$0xff] %v726_v7  ;;  %750 = vst [vmem:[%s1205_s15 + $0x50] sm:$0xff] %v734_v8  ;;  %v695_v15 = vadd.f32 %v930_v9, %v1195_v35  ;;  %v703_v16 = vadd.f32 %v954_v10, %v1195_v35 }
  0xff   : > { %v932_v17 = vpop.f32.mrf.mxu0  ;;  %v956_v18 = vpop.f32.mrf.mxu1 }
 0x100   : > { %v727_v19 = vadd.f32 %v711_v11, %v695_v15  ;;  %v735_v20 = vadd.f32 %v719_v12, %v703_v16  ;;  %v933_v21 = vadd.f32 %v932_v17, %v931_v13  ;;  %v957_v22 = vadd.f32 %v956_v18, %v955_v14 }
 0x101   : > { %v934_v25 = vpop.f32.mrf.mxu0  ;;  %v958_v26 = vpop.f32.mrf.mxu1 }
 0x102   : > { %743 = vst [vmem:[%s1205_s15 + $0x18] sm:$0xff] %v727_v19  ;;  %751 = vst [vmem:[%s1205_s15 + $0x58] sm:$0xff] %v735_v20  ;;  %v696_v27 = vadd.f32 %v933_v21, %v1195_v35  ;;  %v704_v28 = vadd.f32 %v957_v22, %v1195_v35 }
 0x103   : > { %v935_v29 = vpop.f32.mrf.mxu0  ;;  %v959_v30 = vpop.f32.mrf.mxu1 }
 0x104   : > { %v728_v31 = vadd.f32 %v712_v23, %v696_v27  ;;  %v736_v32 = vadd.f32 %v720_v24, %v704_v28  ;;  %v936_v33 = vadd.f32 %v935_v29, %v934_v25  ;;  %v960_v34 = vadd.f32 %v959_v30, %v958_v26 }
 0x105   : > { %v937_v38 = vpop.f32.mrf.mxu0  ;;  %v961_v39 = vpop.f32.mrf.mxu1 }
 0x106   : > { %744 = vst [vmem:[%s1205_s15 + $0x20] sm:$0xff] %v728_v31  ;;  %752 = vst [vmem:[%s1205_s15 + $0x60] sm:$0xff] %v736_v32  ;;  %v697_v40 = vadd.f32 %v936_v33, %v1195_v35  ;;  %v705_v41 = vadd.f32 %v960_v34, %v1195_v35 }
 0x107   : > { %v938_v42 = vpop.f32.mrf.mxu0  ;;  %v962_v43 = vpop.f32.mrf.mxu1 }
 0x108   : > { %v729_v44 = vadd.f32 %v713_v36, %v697_v40  ;;  %v737_v45 = vadd.f32 %v721_v37, %v705_v41  ;;  %v939_v46 = vadd.f32 %v938_v42, %v937_v38  ;;  %v963_v47 = vadd.f32 %v962_v43, %v961_v39 }
 0x109   : > { %v940_v50 = vpop.f32.mrf.mxu0  ;;  %v964_v51 = vpop.f32.mrf.mxu1 }
 0x10a   : > { %745 = vst [vmem:[%s1205_s15 + $0x28] sm:$0xff] %v729_v44  ;;  %753 = vst [vmem:[%s1205_s15 + $0x68] sm:$0xff] %v737_v45  ;;  %v698_v52 = vadd.f32 %v939_v46, %v1195_v35  ;;  %v706_v53 = vadd.f32 %v963_v47, %v1195_v35 }
 0x10b   : > { %v941_v54 = vpop.f32.mrf.mxu0  ;;  %v965_v55 = vpop.f32.mrf.mxu1 }
 0x10c   : > { %v730_v56 = vadd.f32 %v714_v48, %v698_v52  ;;  %v738_v57 = vadd.f32 %v722_v49, %v706_v53  ;;  %v942_v58 = vadd.f32 %v941_v54, %v940_v50  ;;  %v966_v59 = vadd.f32 %v965_v55, %v964_v51 }
 0x10e   : > { %746 = vst [vmem:[%s1205_s15 + $0x30] sm:$0xff] %v730_v56  ;;  %754 = vst [vmem:[%s1205_s15 + $0x70] sm:$0xff] %v738_v57  ;;  %v699_v62 = vadd.f32 %v942_v58, %v1195_v35  ;;  %v707_v63 = vadd.f32 %v966_v59, %v1195_v35 }
 0x110   : > { %v731_v0 = vadd.f32 %v715_v60, %v699_v62  ;;  %v739_v1 = vadd.f32 %v723_v61, %v707_v63 }
 0x112   : > { %747 = vst [vmem:[%s1205_s15 + $0x38] sm:$0xff] %v731_v0  ;;  %755 = vst [vmem:[%s1205_s15 + $0x78] sm:$0xff] %v739_v1 }
 0x113 PF: > { %s14_s17 = sadd.s32 1, %s1069_s17   ;;  %s1265_s15 = smov %s1065_s16 }
 0x114   : > { %p11_p5 = scmp.ge.s32.totalorder %s14_s17, 4   ;;  %s1266_s16 = smov %s1268_s18 }
 0x116   :  { %13 = sbr.rel (!%p11_p5) target bundleno = 2 (0x2), region = 80 }

// kernel: layer_gcn_forward.2
= control target key start
LH: loop header
LB: loop body
LE: loop exit
PB: predicated region body
PF: predicated region fallthrough
CT: control target
= control target key end

     0   :  { %s1653_s18 = smov 0   ;;  %s1655_s19 = smov 0   ;;  %s1807_s0 = inlined_call_operand.vmem [shape: bf16[256,256], index: 0, kind: input, shape index: {}]   ;;  %s1808_s1 = inlined_call_operand.vmem [shape: bf16[256,128], index: 1, kind: input, shape index: {}]   ;;  %s1809_s2 = inlined_call_operand.vmem [shape: bf16[128,128], index: 2, kind: input, shape index: {}]   ;;  %s1810_s3 = inlined_call_operand.vmem [shape: f32[1,128], index: 3, kind: input, shape index: {}]   ;;  %s1811_s4 = inlined_call_operand.vmem [shape: bf16[128,128], index: 4, kind: input, shape index: {}]   ;;  %s1812_s5 = inlined_call_operand.vmem [shape: bf16[256,128], index: 5, kind: output, shape index: {}]  }
   0x1   :  { %s1657_s20 = smov 0  }
   0x2 LB: > { %s27_s21 = sadd.s32 1, %s1617_s19  ;;  %p1222_p0 = scmp.ge.s32.totalorder %s1621_s20, 1  ;;  %s1621_s20 = sphi %s1657_s20, %s15_s20   ;;  %s1617_s19 = sphi %s1655_s19, %s1814_s19   ;;  %s1613_s18 = sphi %s1653_s18, %s1813_s18  }
   0x3   : > { %p29_p1 = scmp.ge.s32.totalorder %s27_s21, 2  ;;  %p219_p2 = scmp.lt.s32.totalorder %s1621_s20, 3 }
   0x5   : > { %s1816_s21 = smov (%p29_p1, %s27_s21), 0  ;;  %p220_p3 = pnand %p1222_p0, %p219_p2 }
   0x6   : > { %s1223_s24 = sshll.u32 (!%p220_p3), %s1613_s18, 4 }
   0x7   : > { %223 = sbr.rel (%p220_p3) target bundleno = 712 (0x2c8), region = 40  ;;  %p259_p4 = scmp.lt.s32.totalorder (!%p220_p3), %s1223_s24, 31 }
   0xc   : > { %v1543_v0 = vld [vmem:[%s1808_s1 + $0x78] sm:$0xff]   ;;  %v1545_v2 = vld [vmem:[%s1808_s1 + $0x70] sm:$0xff]   ;;  %v1547_v4 = vld [vmem:[%s1808_s1 + $0x68] sm:$0xff]   ;;  %s1818_s24 = smov (!%p259_p4, %s1223_s24), 31 }
   0xd   : > { %v1544_v1 = vld [vmem:[%s1808_s1 + $0x38] sm:$0xff]   ;;  %1359 = vmatprep.subr.bf16.mxu0 %v1543_v0  ;;  %v1546_v3 = vld [vmem:[%s1808_s1 + $0x30] sm:$0xff]   ;;  %v1548_v5 = vld [vmem:[%s1808_s1 + $0x28] sm:$0xff]   ;;  %s1295_s14 = sshll.u32 %s1818_s24, 3  ;;  %s1227_s6 = sshll.u32 %s1818_s24, 2 }
   0xe   : > { %1360 = vmatpush3.bf16.msra.mxu0 %v1544_v1  ;;  %v1549_v6 = vld [vmem:[%s1808_s1 + $0x60] sm:$0xff]   ;;  %v1551_v8 = vld [vmem:[%s1808_s1 + $0x58] sm:$0xff]   ;;  %s1704_s22 = scalar_lea.vmem %s1807_s0, %s1295_s14  ;;  %v1553_v10 = vld [vmem:[%s1808_s1 + $0x50] sm:$0xff]   ;;  %s279_s8 = scalar_lea.vmem %s1812_s5, %s1227_s6 }
   0xf   : > { %1361 = vmatprep.subr.bf16.mxu0 %v1545_v2  ;;  %v1550_v7 = vld [vmem:[%s1808_s1 + $0x20] sm:$0xff]   ;;  %v1552_v9 = vld [vmem:[%s1808_s1 + $0x18] sm:$0xff]   ;;  %v1554_v12 = vld [vmem:[%s1808_s1 + $0x10] sm:$0xff]  }
  0x10   : > { %v1561_v11 = vld [vmem:[%s1704_s22 + $0x4] ss:$8 sps:$4 sm:$0xff]   ;;  %v1583_v17 = vld [vmem:[%s1809_s2 + $0x38] sm:$0xff]   ;;  %v1559_v18 = vld [vmem:[%s1704_s22] ss:$8 sps:$4 sm:$0xff]  }
  0x11   : > { %574 = vmatprep.mubr.bf16.mxu0 %v1561_v11  ;;  %v1555_v13 = vld [vmem:[%s1808_s1 + $0x48] sm:$0xff]   ;;  %v1557_v15 = vld [vmem:[%s1808_s1 + $0x40] sm:$0xff]   ;;  %v1584_v19 = vld [vmem:[%s1809_s2 + $0x30] sm:$0xff]   ;;  %1455 = vmatprep.subr.bf16.mxu1 %v1583_v17 }
  0x12   : > { %1362 = vmatpush3.bf16.msra.mxu0 %v1546_v3  ;;  %v1556_v14 = vld [vmem:[%s1808_s1 + $0x8] sm:$0xff]   ;;  %v1558_v16 = vld [vmem:[%s1808_s1] sm:$0xff]   ;;  %v1562_v20 = vld [vmem:[%s1704_s22 + $0x14] ss:$8 sps:$4 sm:$0xff]   ;;  %1456 = vmatpush3.bf16.msra.mxu1 %v1583_v17 }
  0x13   : > { %1363 = vmatprep.subr.bf16.mxu0 %v1547_v4  ;;  %v1585_v21 = vld [vmem:[%s1809_s2 + $0x28] sm:$0xff]   ;;  %1457 = vmatprep.subr.bf16.mxu1 %v1584_v19  ;;  %v1586_v22 = vld [vmem:[%s1809_s2 + $0x20] sm:$0xff]   ;;  %v1564_v23 = vld [vmem:[%s1704_s22 + $0x10] ss:$8 sps:$4 sm:$0xff]  }
  0x14   : > { %v1565_v24 = vld [vmem:[%s1704_s22 + $0x24] ss:$8 sps:$4 sm:$0xff]   ;;  %v1567_v25 = vld [vmem:[%s1704_s22 + $0x20] ss:$8 sps:$4 sm:$0xff]   ;;  %v1568_v26 = vld [vmem:[%s1704_s22 + $0x34] ss:$8 sps:$4 sm:$0xff]  }
  0x15   : > { %v1570_v27 = vld [vmem:[%s1704_s22 + $0x30] ss:$8 sps:$4 sm:$0xff]   ;;  %v1571_v28 = vld [vmem:[%s1704_s22 + $0x44] ss:$8 sps:$4 sm:$0xff]   ;;  %v1573_v29 = vld [vmem:[%s1704_s22 + $0x40] ss:$8 sps:$4 sm:$0xff]  }
  0x16   : > { %1364 = vmatpush3.bf16.msra.mxu0 %v1548_v5  ;;  %1458 = vmatpush3.bf16.msra.mxu1 %v1584_v19  ;;  %v1574_v30 = vld [vmem:[%s1704_s22 + $0x54] ss:$8 sps:$4 sm:$0xff]   ;;  %v1576_v31 = vld [vmem:[%s1704_s22 + $0x50] ss:$8 sps:$4 sm:$0xff]   ;;  %v1577_v32 = vld [vmem:[%s1704_s22 + $0x64] ss:$8 sps:$4 sm:$0xff]  }
  0x17   : > { %1365 = vmatprep.subr.bf16.mxu0 %v1549_v6  ;;  %1459 = vmatprep.subr.bf16.mxu1 %v1585_v21  ;;  %v1579_v33 = vld [vmem:[%s1704_s22 + $0x60] ss:$8 sps:$4 sm:$0xff]   ;;  %v1580_v34 = vld [vmem:[%s1704_s22 + $0x74] ss:$8 sps:$4 sm:$0xff]   ;;  %v1582_v35 = vld [vmem:[%s1704_s22 + $0x70] ss:$8 sps:$4 sm:$0xff]  }
  0x18   : > { %v1587_v36 = vld [vmem:[%s1809_s2 + $0x18] sm:$0xff]   ;;  %v1588_v37 = vld [vmem:[%s1809_s2 + $0x10] sm:$0xff]   ;;  %v1589_v38 = vld [vmem:[%s1809_s2 + $0x8] sm:$0xff]  }
  0x19   : > { %v1590_v39 = vld [vmem:[%s1809_s2] sm:$0xff]   ;;  %v1591_v40 = vld [vmem:[%s1811_s4 + $0x38] sm:$0xff]   ;;  %v1592_v56 = vld [vmem:[%s1811_s4 + $0x30] sm:$0xff]  }
  0x1a   : > { %1366 = vmatpush3.bf16.msra.mxu0 %v1550_v7  ;;  %1460 = vmatpush3.bf16.msra.mxu1 %v1585_v21  ;;  %v1593_v59 = vld [vmem:[%s1811_s4 + $0x28] sm:$0xff]   ;;  %v1594_v1 = vld [vmem:[%s1811_s4 + $0x20] sm:$0xff]   ;;  %v1595_v4 = vld [vmem:[%s1811_s4 + $0x18] sm:$0xff]  }
  0x1b   : > { %1367 = vmatprep.subr.bf16.mxu0 %v1551_v8  ;;  %1461 = vmatprep.subr.bf16.mxu1 %v1586_v22 }
  0x1e   : > { %1368 = vmatpush3.bf16.msra.mxu0 %v1552_v9  ;;  %1462 = vmatpush3.bf16.msra.mxu1 %v1586_v22 }
  0x1f   : > { %1369 = vmatprep.subr.bf16.mxu0 %v1553_v10  ;;  %1463 = vmatprep.subr.bf16.mxu1 %v1587_v36 }
  0x22   : > { %1370 = vmatpush3.bf16.msra.mxu0 %v1554_v12  ;;  %1464 = vmatpush3.bf16.msra.mxu1 %v1587_v36 }
  0x23   : > { %1371 = vmatprep.subr.bf16.mxu0 %v1555_v13  ;;  %1465 = vmatprep.subr.bf16.mxu1 %v1588_v37 }
  0x26   : > { %1372 = vmatpush3.bf16.msra.mxu0 %v1556_v14  ;;  %1466 = vmatpush3.bf16.msra.mxu1 %v1588_v37  ;;  %v1596_v37 = vld [vmem:[%s1811_s4 + $0x10] sm:$0xff]  }
  0x27   : > { %1373 = vmatprep.subr.bf16.mxu0 %v1557_v15  ;;  %1467 = vmatprep.subr.bf16.mxu1 %v1589_v38 }
  0x2a   : > { %1374 = vmatpush3.bf16.msra.mxu0 %v1558_v16  ;;  %1468 = vmatpush3.bf16.msra.mxu1 %v1589_v38  ;;  %v1597_v38 = vld [vmem:[%s1811_s4 + $0x8] sm:$0xff]  }
  0x2b   : > { %1469 = vmatprep.subr.bf16.mxu1 %v1590_v39 }
  0x2d   : > { %575 = vmatmul.mubr.bf16.vlgmr.msra.gmra.mxu0 %v1559_v18 }
  0x2e   : > { %582 = vmatprep.mubr.bf16.mxu0 %v1562_v20  ;;  %1470 = vmatpush3.bf16.msra.mxu1 %v1590_v39  ;;  %v1598_v39 = vld [vmem:[%s1811_s4] sm:$0xff]  }
  0x2f   : > { %1487 = vmatprep.subr.bf16.mxu1 %v1591_v40 }
  0x35   : > { %583 = vmatmul.mubr.bf16.gmra.mxu0 %v1564_v23 }
  0x36   : > { %590 = vmatprep.mubr.bf16.mxu0 %v1565_v24 }
  0x3d   : > { %591 = vmatmul.mubr.bf16.gmra.mxu0 %v1567_v25 }
  0x3e   : > { %598 = vmatprep.mubr.bf16.mxu0 %v1568_v26 }
  0x45   : > { %599 = vmatmul.mubr.bf16.gmra.mxu0 %v1570_v27 }
  0x46   : > { %606 = vmatprep.mubr.bf16.mxu0 %v1571_v28 }
  0x4d   : > { %607 = vmatmul.mubr.bf16.gmra.mxu0 %v1573_v29 }
  0x4e   : > { %614 = vmatprep.mubr.bf16.mxu0 %v1574_v30 }
  0x55   : > { %615 = vmatmul.mubr.bf16.gmra.mxu0 %v1576_v31 }
  0x56   : > { %622 = vmatprep.mubr.bf16.mxu0 %v1577_v32 }
  0x5d   : > { %623 = vmatmul.mubr.bf16.gmra.mxu0 %v1579_v33 }
  0x5e   : > { %630 = vmatprep.mubr.bf16.mxu0 %v1580_v34 }
  0x65   : > { %631 = vmatmul.mubr.bf16.gmra.mxu0 %v1582_v35 }
  0xed   : > { %v1375_v41 = vpop.f32.mrf.mxu0 }
  0xef   : > { %v1376_v42 = vpop.f32.mrf.mxu0 }
  0xf0   : > { %v1377_v45 = vadd.f32 %v1376_v42, %v1375_v41  ;;  %v1260_v42 = vld [vmem:[%s1810_s3] ss:$0 sm:$0xff] }
  0xf1   : > { %v1378_v43 = vpop.f32.mrf.mxu0 }
  0xf3   : > { %v1379_v44 = vpop.f32.mrf.mxu0 }
  0xf4   : > { %v1380_v46 = vadd.f32 %v1379_v44, %v1378_v43 }
  0xf5   : > { %v1381_v47 = vpop.f32.mrf.mxu0 }
  0xf6   : > { %v690_v48 = vpack.c.bf16 %v1380_v46, %v1377_v45 }
  0xf7   : > { %v1382_v49 = vpop.f32.mrf.mxu0 }
  0xf8   : > { %1471 = vmatprep.mubr.bf16.mxu1 %v690_v48  ;;  %v1383_v52 = vadd.f32 %v1382_v49, %v1381_v47 }
  0xf9   : > { %v1384_v50 = vpop.f32.mrf.mxu0 }
  0xfb   : > { %v1385_v51 = vpop.f32.mrf.mxu0 }
  0xfc   : > { %v1386_v53 = vadd.f32 %v1385_v51, %v1384_v50 }
  0xfd   : > { %v1387_v54 = vpop.f32.mrf.mxu0 }
  0xfe   : > { %v691_v55 = vpack.c.bf16 %v1386_v53, %v1383_v52 }
  0xff   : > { %v1388_v57 = vpop.f32.mrf.mxu0 }
 0x100   : > { %1472 = vmatmul.mubr.bf16.vlgmr.msra.gmra.mxu1 %v691_v55  ;;  %v1389_v61 = vadd.f32 %v1388_v57, %v1387_v54 }
 0x101   : > { %v1390_v58 = vpop.f32.mrf.mxu0  ;;  %1488 = vmatpush3.bf16.msra.mxu1 %v1591_v40 }
 0x102   : > { %1489 = vmatprep.subr.bf16.mxu1 %v1592_v56 }
 0x103   : > { %v1391_v60 = vpop.f32.mrf.mxu0 }
 0x104   : > { %v1392_v62 = vadd.f32 %v1391_v60, %v1390_v58 }
 0x105   : > { %v1393_v63 = vpop.f32.mrf.mxu0  ;;  %1490 = vmatpush3.bf16.msra.mxu1 %v1592_v56 }
 0x106   : > { %v692_v0 = vpack.c.bf16 %v1392_v62, %v1389_v61  ;;  %1491 = vmatprep.subr.bf16.mxu1 %v1593_v59 }
 0x107   : > { %v1394_v2 = vpop.f32.mrf.mxu0 }
 0x108   : > { %1475 = vmatprep.mubr.bf16.mxu1 %v692_v0  ;;  %v1395_v6 = vadd.f32 %v1394_v2, %v1393_v63 }
 0x109   : > { %v1396_v3 = vpop.f32.mrf.mxu0  ;;  %1492 = vmatpush3.bf16.msra.mxu1 %v1593_v59 }
 0x10a   : > { %1493 = vmatprep.subr.bf16.mxu1 %v1594_v1 }
 0x10b   : > { %v1397_v5 = vpop.f32.mrf.mxu0 }
 0x10c   : > { %v1398_v7 = vadd.f32 %v1397_v5, %v1396_v3 }
 0x10d   : > { %v1399_v8 = vpop.f32.mrf.mxu0  ;;  %1494 = vmatpush3.bf16.msra.mxu1 %v1594_v1 }
 0x10e   : > { %v693_v9 = vpack.c.bf16 %v1398_v7, %v1395_v6  ;;  %1495 = vmatprep.subr.bf16.mxu1 %v1595_v4 }
 0x10f   : > { %v1400_v10 = vpop.f32.mrf.mxu0 }
 0x110   : > { %1476 = vmatmul.mubr.bf16.gmra.mxu1 %v693_v9  ;;  %v1401_v13 = vadd.f32 %v1400_v10, %v1399_v8 }
 0x111   : > { %v1402_v11 = vpop.f32.mrf.mxu0  ;;  %1496 = vmatpush3.bf16.msra.mxu1 %v1595_v4 }
 0x112   : > { %1497 = vmatprep.subr.bf16.mxu1 %v1596_v37 }
 0x113   : > { %v1403_v12 = vpop.f32.mrf.mxu0 }
 0x114   : > { %v1404_v14 = vadd.f32 %v1403_v12, %v1402_v11 }
 0x115   : > { %v1405_v15 = vpop.f32.mrf.mxu0  ;;  %1498 = vmatpush3.bf16.msra.mxu1 %v1596_v37 }
 0x116   : > { %v694_v16 = vpack.c.bf16 %v1404_v14, %v1401_v13  ;;  %1499 = vmatprep.subr.bf16.mxu1 %v1597_v38 }
 0x117   : > { %v1406_v17 = vpop.f32.mrf.mxu0 }
 0x118   : > { %1479 = vmatprep.mubr.bf16.mxu1 %v694_v16  ;;  %v1407_v20 = vadd.f32 %v1406_v17, %v1405_v15 }
 0x119   : > { %v1408_v18 = vpop.f32.mrf.mxu0  ;;  %1500 = vmatpush3.bf16.msra.mxu1 %v1597_v38 }
 0x11a   : > { %1501 = vmatprep.subr.bf16.mxu1 %v1598_v39 }
 0x11b   : > { %v1409_v19 = vpop.f32.mrf.mxu0 }
 0x11c   : > { %v1410_v21 = vadd.f32 %v1409_v19, %v1408_v18 }
 0x11d   : > { %v1411_v22 = vpop.f32.mrf.mxu0  ;;  %1502 = vmatpush3.bf16.msra.mxu1 %v1598_v39 }
 0x11e   : > { %v695_v23 = vpack.c.bf16 %v1410_v21, %v1407_v20 }
 0x11f   : > { %v1412_v24 = vpop.f32.mrf.mxu0 }
 0x120   : > { %1480 = vmatmul.mubr.bf16.gmra.mxu1 %v695_v23  ;;  %v1413_v27 = vadd.f32 %v1412_v24, %v1411_v22 }
 0x121   : > { %v1414_v25 = vpop.f32.mrf.mxu0 }
 0x123   : > { %v1415_v26 = vpop.f32.mrf.mxu0 }
 0x124   : > { %v1416_v28 = vadd.f32 %v1415_v26, %v1414_v25 }
 0x125   : > { %v1417_v29 = vpop.f32.mrf.mxu0 }
 0x126   : > { %v696_v30 = vpack.c.bf16 %v1416_v28, %v1413_v27 }
 0x127   : > { %v1418_v31 = vpop.f32.mrf.mxu0 }
 0x128   : > { %1483 = vmatprep.mubr.bf16.mxu1 %v696_v30  ;;  %v1419_v34 = vadd.f32 %v1418_v31, %v1417_v29 }
 0x129   : > { %v1420_v32 = vpop.f32.mrf.mxu0 }
 0x12b   : > { %v1421_v33 = vpop.f32.mrf.mxu0 }
 0x12c   : > { %v1422_v35 = vadd.f32 %v1421_v33, %v1420_v32 }
 0x12e   : > { %v697_v36 = vpack.c.bf16 %v1422_v35, %v1419_v34 }
 0x130   : > { %1484 = vmatmul.mubr.bf16.gmra.mxu1 %v697_v36 }
 0x1c0   : > { %v1473_v40 = vpop.f32.mrf.mxu1 }
 0x1c1   : > { %v812_v46 = vadd.f32 %v1473_v40, %v1260_v42 }
 0x1c2   : > { %v803_v41 = vpop.f32.mrf.mxu1 }
 0x1c3   : > { %v804_v44 = vadd.f32 %v1260_v42, %v803_v41  ;;  %v868_v52 = vmax.f32 %v812_v46, 0.0 }
 0x1c4   : > { %v1474_v43 = vpop.f32.mrf.mxu1 }
 0x1c5   : > { %v815_v45 = vadd.f32 %v1474_v43, %v1260_v42  ;;  %v866_v50 = vmax.f32 %v804_v44, 0.0 }
 0x1c6   : > { %v806_v47 = vpop.f32.mrf.mxu1 }
 0x1c7   : > { %v807_v48 = vadd.f32 %v1260_v42, %v806_v47  ;;  %v869_v49 = vmax.f32 %v815_v45, 0.0 }
 0x1c9   : > { %v867_v51 = vmax.f32 %v807_v48, 0.0  ;;  %v883_v54 = vpack.c.bf16 %v869_v49, %v868_v52 }
 0x1cb   : > { %v882_v53 = vpack.c.bf16 %v867_v51, %v866_v50 }
 0x1cd   : > { %1503 = vmatprep.mubr.bf16.mxu1 %v882_v53 }
 0x1ce   : > { %1504 = vmatmul.mubr.bf16.vlgmr.msra.gmra.mxu1 %v883_v54 }
 0x1d0   : > { %v1477_v55 = vpop.f32.mrf.mxu1 }
 0x1d1   : > { %v828_v60 = vadd.f32 %v1477_v55, %v1260_v42 }
 0x1d2   : > { %v819_v56 = vpop.f32.mrf.mxu1 }
 0x1d3   : > { %v820_v58 = vadd.f32 %v1260_v42, %v819_v56  ;;  %v872_v2 = vmax.f32 %v828_v60, 0.0 }
 0x1d4   : > { %v1478_v57 = vpop.f32.mrf.mxu1 }
 0x1d5   : > { %v831_v59 = vadd.f32 %v1478_v57, %v1260_v42  ;;  %v870_v0 = vmax.f32 %v820_v58, 0.0 }
 0x1d6   : > { %v822_v61 = vpop.f32.mrf.mxu1 }
 0x1d7   : > { %v823_v62 = vadd.f32 %v1260_v42, %v822_v61  ;;  %v873_v63 = vmax.f32 %v831_v59, 0.0 }
 0x1d9   : > { %v871_v1 = vmax.f32 %v823_v62, 0.0  ;;  %v885_v4 = vpack.c.bf16 %v873_v63, %v872_v2 }
 0x1db   : > { %v884_v3 = vpack.c.bf16 %v871_v1, %v870_v0 }
 0x1dd   : > { %1507 = vmatprep.mubr.bf16.mxu1 %v884_v3 }
 0x1de   : > { %1508 = vmatmul.mubr.bf16.gmra.mxu1 %v885_v4 }
 0x1e0   : > { %v1481_v5 = vpop.f32.mrf.mxu1 }
 0x1e1   : > { %v844_v10 = vadd.f32 %v1481_v5, %v1260_v42 }
 0x1e2   : > { %v835_v6 = vpop.f32.mrf.mxu1 }
 0x1e3   : > { %v836_v8 = vadd.f32 %v1260_v42, %v835_v6  ;;  %v876_v16 = vmax.f32 %v844_v10, 0.0 }
 0x1e4   : > { %v1482_v7 = vpop.f32.mrf.mxu1 }
 0x1e5   : > { %v847_v9 = vadd.f32 %v1482_v7, %v1260_v42  ;;  %v874_v14 = vmax.f32 %v836_v8, 0.0 }
 0x1e6   : > { %v838_v11 = vpop.f32.mrf.mxu1 }
 0x1e7   : > { %v839_v12 = vadd.f32 %v1260_v42, %v838_v11  ;;  %v877_v13 = vmax.f32 %v847_v9, 0.0 }
 0x1e9   : > { %v875_v15 = vmax.f32 %v839_v12, 0.0  ;;  %v887_v18 = vpack.c.bf16 %v877_v13, %v876_v16 }
 0x1eb   : > { %v886_v17 = vpack.c.bf16 %v875_v15, %v874_v14 }
 0x1ed   : > { %1511 = vmatprep.mubr.bf16.mxu1 %v886_v17 }
 0x1ee   : > { %1512 = vmatmul.mubr.bf16.gmra.mxu1 %v887_v18 }
 0x1f0   : > { %v1485_v19 = vpop.f32.mrf.mxu1 }
 0x1f1   : > { %v860_v24 = vadd.f32 %v1485_v19, %v1260_v42 }
 0x1f2   : > { %v851_v20 = vpop.f32.mrf.mxu1 }
 0x1f3   : > { %v852_v22 = vadd.f32 %v1260_v42, %v851_v20  ;;  %v880_v30 = vmax.f32 %v860_v24, 0.0 }
 0x1f4   : > { %v1486_v21 = vpop.f32.mrf.mxu1 }
 0x1f5   : > { %v863_v23 = vadd.f32 %v1486_v21, %v1260_v42  ;;  %v878_v28 = vmax.f32 %v852_v22, 0.0 }
 0x1f6   : > { %v854_v25 = vpop.f32.mrf.mxu1 }
 0x1f7   : > { %v855_v26 = vadd.f32 %v1260_v42, %v854_v25  ;;  %v881_v27 = vmax.f32 %v863_v23, 0.0 }
 0x1f9   : > { %v879_v29 = vmax.f32 %v855_v26, 0.0  ;;  %v889_v32 = vpack.c.bf16 %v881_v27, %v880_v30 }
 0x1fb   : > { %v888_v31 = vpack.c.bf16 %v879_v29, %v878_v28 }
 0x1fd   : > { %1515 = vmatprep.mubr.bf16.mxu1 %v888_v31 }
 0x1fe   : > { %1516 = vmatmul.mubr.bf16.gmra.mxu1 %v889_v32 }
 0x28e   : > { %v1505_v33 = vpop.f32.mrf.mxu1 }
 0x290   : > { %v988_v34 = vpop.f32.mrf.mxu1 }
 0x292   : > { %v1506_v35 = vpop.f32.mrf.mxu1 }
 0x293   : > { %v1320_v36 = vpack.c.bf16 %v1506_v35, %v1505_v33 }
 0x294   : > { %v991_v37 = vpop.f32.mrf.mxu1 }
 0x295   : > { %1352 = vst [vmem:[%s279_s8 + $0x8] sm:$0xff] %v1320_v36   ;;  %v1315_v38 = vpack.c.bf16 %v991_v37, %v988_v34 }
 0x297   : > { %1316 = vst [vmem:[%s279_s8] sm:$0xff] %v1315_v38  }
 0x29e   : > { %v1509_v39 = vpop.f32.mrf.mxu1 }
 0x2a0   : > { %v1004_v40 = vpop.f32.mrf.mxu1 }
 0x2a2   : > { %v1510_v41 = vpop.f32.mrf.mxu1 }
 0x2a3   : > { %v1330_v42 = vpack.c.bf16 %v1510_v41, %v1509_v39 }
 0x2a4   : > { %v1007_v43 = vpop.f32.mrf.mxu1 }
 0x2a5   : > { %1354 = vst [vmem:[%s279_s8 + $0x18] sm:$0xff] %v1330_v42   ;;  %v1325_v44 = vpack.c.bf16 %v1007_v43, %v1004_v40 }
 0x2a7   : > { %1353 = vst [vmem:[%s279_s8 + $0x10] sm:$0xff] %v1325_v44  }
 0x2ae   : > { %v1513_v45 = vpop.f32.mrf.mxu1 }
 0x2b0   : > { %v1020_v46 = vpop.f32.mrf.mxu1 }
 0x2b2   : > { %v1514_v47 = vpop.f32.mrf.mxu1 }
 0x2b3   : > { %v1340_v48 = vpack.c.bf16 %v1514_v47, %v1513_v45 }
 0x2b4   : > { %v1023_v49 = vpop.f32.mrf.mxu1 }
 0x2b5   : > { %1356 = vst [vmem:[%s279_s8 + $0x28] sm:$0xff] %v1340_v48   ;;  %v1335_v50 = vpack.c.bf16 %v1023_v49, %v1020_v46 }
 0x2b7   : > { %1355 = vst [vmem:[%s279_s8 + $0x20] sm:$0xff] %v1335_v50  }
 0x2be   : > { %v1517_v51 = vpop.f32.mrf.mxu1 }
 0x2c0   : > { %v1036_v52 = vpop.f32.mrf.mxu1 }
 0x2c2   : > { %v1518_v53 = vpop.f32.mrf.mxu1 }
 0x2c3   : > { %v1350_v54 = vpack.c.bf16 %v1518_v53, %v1517_v51 }
 0x2c4   : > { %v1039_v55 = vpop.f32.mrf.mxu1 }
 0x2c5   : > { %1358 = vst [vmem:[%s279_s8 + $0x38] sm:$0xff] %v1350_v54   ;;  %v1345_v56 = vpack.c.bf16 %v1039_v55, %v1036_v52 }
 0x2c7   : > { %1357 = vst [vmem:[%s279_s8 + $0x30] sm:$0xff] %v1345_v56  }
 0x2c8 PF: > { %s15_s20 = sadd.s32 1, %s1621_s20   ;;  %s1813_s18 = smov %s1617_s19 }
 0x2c9   : > { %p12_p5 = scmp.ge.s32.totalorder %s15_s20, 4   ;;  %s1814_s19 = smov %s1816_s21 }
 0x2cb   :  { %14 = sbr.rel (!%p12_p5) target bundleno = 2 (0x2), region = 81 }

</bundles_post_ra>
